<compile_context>
chip_gen: v6e
topology: v6e:2x2x1
jax: 0.10.0
libtpu: 0.0.40
codegen_flags: <defaults>
</compile_context>

<pallas_src>
import math

import jax
import jax.numpy as jnp
from jax.experimental import pallas as pl
from jax.experimental.pallas import tpu as pltpu

_INV_SQRT2 = 1.0 / math.sqrt(2.0)
_LN_EPS = 1e-5  # nn.LayerNorm default


def _round_up(n, m):
    return (n + m - 1) // m * m


def _make_kernel(hidden_real, feat_real):
    """Kernel factory: real (unpadded) LN widths are baked in as constants."""
    inv_h = 1.0 / float(hidden_real)
    inv_f = 1.0 / float(feat_real)

    def kernel(x_ref, w1_ref, b1_ref, g1_ref, be1_ref,
               w2_ref, b2_ref, g2_ref, be2_ref, o_ref):
        x = x_ref[...]                      # (tm, F_pad) f32
        w1 = w1_ref[...]                    # (F_pad, H_pad) bf16
        w2 = w2_ref[...]                    # (H_pad, F_pad) bf16
        b1, g1, be1 = b1_ref[...], g1_ref[...], be1_ref[...]   # (1, H_pad) f32
        b2, g2, be2 = b2_ref[...], g2_ref[...], be2_ref[...]   # (1, F_pad) f32

        # Linear(in_features -> hidden_features): bf16 MXU operands, f32 accumulate.
        h = jnp.dot(x.astype(jnp.bfloat16), w1,
                    preferred_element_type=jnp.float32) + b1

        # LayerNorm(hidden): single-pass sum / sum-of-squares. Padded lanes are
        # exactly zero, so sums are exact; divide by the real hidden width.
        s = jnp.sum(h, axis=-1, keepdims=True)
        ss = jnp.sum(h * h, axis=-1, keepdims=True)
        mu = s * inv_h
        var = jnp.maximum(ss * inv_h - mu * mu, 0.0)
        h = (h - mu) * jax.lax.rsqrt(var + _LN_EPS) * g1 + be1

        # GELU (exact erf — torch nn.GELU default). Padded lanes stay 0 (g1/be1 pad = 0).
        h = 0.5 * h * (1.0 + jax.lax.erf(h * _INV_SQRT2))
        # Dropout(0.1): identity in eval mode.

        # Linear(hidden_features -> in_features)
        y = jnp.dot(h.astype(jnp.bfloat16), w2,
                    preferred_element_type=jnp.float32) + b2

        # LayerNorm(in_features)
        s = jnp.sum(y, axis=-1, keepdims=True)
        ss = jnp.sum(y * y, axis=-1, keepdims=True)
        mu = s * inv_f
        var = jnp.maximum(ss * inv_f - mu * mu, 0.0)
        y = (y - mu) * jax.lax.rsqrt(var + _LN_EPS) * g2 + be2

        # Residual connection (f32 x, padded lanes of x and y are both 0).
        o_ref[...] = (x + y).astype(o_ref.dtype)

    return kernel


def residual_block(x, params, *, tm=256):
    """x: [B, in_features] float32. params: dict (see init_params)."""
    B, F = x.shape
    H = params["w1"].shape[1]

    # Lane-align feature dims, sublane-align the batch tile.
    F_pad = _round_up(F, 128)
    H_pad = _round_up(H, 128)
    tm = max(8, _round_up(min(tm, _round_up(B, 8)), 8))
    B_pad = _round_up(B, tm)

    def pad2(a, r, c):
        if a.shape == (r, c):
            return a
        return jnp.pad(a, ((0, r - a.shape[0]), (0, c - a.shape[1])))

    xp = pad2(x, B_pad, F_pad)
    # Weights cast to bf16 on the host: halves weight DMA, MXU-native operand dtype.
    w1 = pad2(params["w1"], F_pad, H_pad).astype(jnp.bfloat16)
    w2 = pad2(params["w2"], H_pad, F_pad).astype(jnp.bfloat16)
    b1 = pad2(params["b1"], 1, H_pad)
    g1 = pad2(params["ln1_g"], 1, H_pad)
    be1 = pad2(params["ln1_b"], 1, H_pad)
    b2 = pad2(params["b2"], 1, F_pad)
    g2 = pad2(params["ln2_g"], 1, F_pad)
    be2 = pad2(params["ln2_b"], 1, F_pad)

    full = lambda i: (0, 0)
    grid = (B_pad // tm,)

    grid_spec = pltpu.PrefetchScalarGridSpec(
        num_scalar_prefetch=0,
        grid=grid,
        in_specs=[
            pl.BlockSpec((tm, F_pad), lambda i: (i, 0)),   # x tile
            pl.BlockSpec((F_pad, H_pad), full),            # w1 (resident)
            pl.BlockSpec((1, H_pad), full),                # b1
            pl.BlockSpec((1, H_pad), full),                # ln1 gamma
            pl.BlockSpec((1, H_pad), full),                # ln1 beta
            pl.BlockSpec((H_pad, F_pad), full),            # w2 (resident)
            pl.BlockSpec((1, F_pad), full),                # b2
            pl.BlockSpec((1, F_pad), full),                # ln2 gamma
            pl.BlockSpec((1, F_pad), full),                # ln2 beta
        ],
        out_specs=pl.BlockSpec((tm, F_pad), lambda i: (i, 0)),
    )

    # VMEM budget: double-buffered x/out tiles + weights + vectors + headroom.
    tile_bytes = tm * F_pad * 4
    wt_bytes = (F_pad * H_pad + H_pad * F_pad) * 2           # bf16 weights
    vec_bytes = (3 * H_pad + 3 * F_pad) * 4
    act_bytes = 4 * tm * H_pad * 4                           # in-kernel intermediates
    needed = 2 * (2 * tile_bytes) + 2 * wt_bytes + 2 * vec_bytes + act_bytes
    vmem_limit = int(min(max(needed + (8 << 20), 32 << 20), 64 << 20))

    cost = pl.CostEstimate(
        flops=int(4 * B_pad * F_pad * H_pad),                # two matmuls
        transcendentals=int(B_pad * (H_pad + 2)),            # erf + rsqrts
        bytes_accessed=int(2 * B_pad * F_pad * 4 + wt_bytes + vec_bytes),
    )

    out = pl.pallas_call(
        _make_kernel(H, F),
        out_shape=jax.ShapeDtypeStruct((B_pad, F_pad), x.dtype),
        grid_spec=grid_spec,
        compiler_params=pltpu.CompilerParams(
            dimension_semantics=("parallel",),
            vmem_limit_bytes=vmem_limit,
        ),
        cost_estimate=cost,
    )(xp, w1, b1, g1, be1, w2, b2, g2, be2)

    if B_pad != B or F_pad != F:
        out = out[:B, :F]
    return out


def init_params(key, in_features, hidden_features):
    """PyTorch-default-style init. Weights stored transposed ([fan_in, fan_out])."""
    k1, k2, k3, k4 = jax.random.split(key, 4)
    bound1 = 1.0 / math.sqrt(in_features)
    bound2 = 1.0 / math.sqrt(hidden_features)
    return {
        "w1": jax.random.uniform(k1, (in_features, hidden_features), jnp.float32,
                                 -bound1, bound1),
        "b1": jax.random.uniform(k2, (1, hidden_features), jnp.float32,
                                 -bound1, bound1),
        "ln1_g": jnp.ones((1, hidden_features), jnp.float32),
        "ln1_b": jnp.zeros((1, hidden_features), jnp.float32),
        "w2": jax.random.uniform(k3, (hidden_features, in_features), jnp.float32,
                                 -bound2, bound2),
        "b2": jax.random.uniform(k4, (1, in_features), jnp.float32,
                                 -bound2, bound2),
        "ln2_g": jnp.ones((1, in_features), jnp.float32),
        "ln2_b": jnp.zeros((1, in_features), jnp.float32),
    }


def residual_block_ref(x, p, matmul_dtype=jnp.float32):
    """Pure-JAX reference (torch-style two-pass LN, exact-erf GELU)."""
    h = jnp.dot(x.astype(matmul_dtype), p["w1"].astype(matmul_dtype),
                preferred_element_type=jnp.float32) + p["b1"]
    mu = h.mean(-1, keepdims=True)
    var = ((h - mu) ** 2).mean(-1, keepdims=True)
    h = (h - mu) / jnp.sqrt(var + _LN_EPS) * p["ln1_g"] + p["ln1_b"]
    h = 0.5 * h * (1.0 + jax.lax.erf(h * _INV_SQRT2))
    y = jnp.dot(h.astype(matmul_dtype), p["w2"].astype(matmul_dtype),
                preferred_element_type=jnp.float32) + p["b2"]
    mu = y.mean(-1, keepdims=True)
    var = ((y - mu) ** 2).mean(-1, keepdims=True)
    y = (y - mu) / jnp.sqrt(var + _LN_EPS) * p["ln2_g"] + p["ln2_b"]
    return x + y


if __name__ == "__main__":
    in_features = 32
    hidden_features = 64
    batch = 16

    key = jax.random.PRNGKey(0)
    kx, kp = jax.random.split(key)
    x = jax.random.normal(kx, (batch, in_features), dtype=jnp.float32)
    params = init_params(kp, in_features, hidden_features)

    out = residual_block(x, params)
    out = jax.block_until_ready(out)
    assert out.shape == (batch, in_features)

    # Tight check against a reference that uses the same bf16 matmul operands.
    ref_bf16 = residual_block_ref(x, params, matmul_dtype=jnp.bfloat16)
    assert jnp.allclose(out, ref_bf16, atol=2e-3, rtol=2e-3)
    # Sanity check against the full-f32 reference (bf16 matmul rounding only).
    ref_f32 = residual_block_ref(x, params, matmul_dtype=jnp.float32)
    assert jnp.allclose(out, ref_f32, atol=5e-2, rtol=5e-2)

    print("KERNEL_OK")
</pallas_src>

<mosaic_0001>
module attributes {stable_mosaic.version = 11 : i64} {
  func.func @kernel(%arg0: i32, %arg1: memref<16x128xf32, #tpu.memory_space<vmem>>, %arg2: memref<128x128xbf16, #tpu.memory_space<vmem>>, %arg3: memref<1x128xf32, #tpu.memory_space<vmem>>, %arg4: memref<1x128xf32, #tpu.memory_space<vmem>>, %arg5: memref<1x128xf32, #tpu.memory_space<vmem>>, %arg6: memref<128x128xbf16, #tpu.memory_space<vmem>>, %arg7: memref<1x128xf32, #tpu.memory_space<vmem>>, %arg8: memref<1x128xf32, #tpu.memory_space<vmem>>, %arg9: memref<1x128xf32, #tpu.memory_space<vmem>>, %arg10: memref<16x128xf32, #tpu.memory_space<vmem>>) attributes {dimension_semantics = [#tpu.dimension_semantics<parallel>], iteration_bounds = array<i64: 1>, scalar_prefetch = 0 : i64, scratch_operands = 0 : i64, tpu.core_type = #tpu.core_type<tc>, window_params = [{transform_indices = @transform_0, window_bounds = array<i64: 16, 128>}, {pipeline_mode = #tpu.pipeline_mode<synchronous>, transform_indices = @transform_1, window_bounds = array<i64: 128, 128>}, {pipeline_mode = #tpu.pipeline_mode<synchronous>, transform_indices = @transform_2, window_bounds = array<i64: 1, 128>}, {pipeline_mode = #tpu.pipeline_mode<synchronous>, transform_indices = @transform_3, window_bounds = array<i64: 1, 128>}, {pipeline_mode = #tpu.pipeline_mode<synchronous>, transform_indices = @transform_4, window_bounds = array<i64: 1, 128>}, {pipeline_mode = #tpu.pipeline_mode<synchronous>, transform_indices = @transform_5, window_bounds = array<i64: 128, 128>}, {pipeline_mode = #tpu.pipeline_mode<synchronous>, transform_indices = @transform_6, window_bounds = array<i64: 1, 128>}, {pipeline_mode = #tpu.pipeline_mode<synchronous>, transform_indices = @transform_7, window_bounds = array<i64: 1, 128>}, {pipeline_mode = #tpu.pipeline_mode<synchronous>, transform_indices = @transform_8, window_bounds = array<i64: 1, 128>}, {transform_indices = @transform_9, window_bounds = array<i64: 16, 128>}]} {
    %c0 = arith.constant 0 : index
    %c0_0 = arith.constant 0 : index
    %0 = vector.load %arg1[%c0, %c0_0] : memref<16x128xf32, #tpu.memory_space<vmem>>, vector<16x128xf32>
    %c0_1 = arith.constant 0 : index
    %c0_2 = arith.constant 0 : index
    %1 = vector.load %arg2[%c0_1, %c0_2] : memref<128x128xbf16, #tpu.memory_space<vmem>>, vector<128x128xbf16>
    %c0_3 = arith.constant 0 : index
    %c0_4 = arith.constant 0 : index
    %2 = vector.load %arg6[%c0_3, %c0_4] : memref<128x128xbf16, #tpu.memory_space<vmem>>, vector<128x128xbf16>
    %c0_5 = arith.constant 0 : index
    %c0_6 = arith.constant 0 : index
    %3 = vector.load %arg3[%c0_5, %c0_6] : memref<1x128xf32, #tpu.memory_space<vmem>>, vector<1x128xf32>
    %c0_7 = arith.constant 0 : index
    %c0_8 = arith.constant 0 : index
    %4 = vector.load %arg4[%c0_7, %c0_8] : memref<1x128xf32, #tpu.memory_space<vmem>>, vector<1x128xf32>
    %c0_9 = arith.constant 0 : index
    %c0_10 = arith.constant 0 : index
    %5 = vector.load %arg5[%c0_9, %c0_10] : memref<1x128xf32, #tpu.memory_space<vmem>>, vector<1x128xf32>
    %c0_11 = arith.constant 0 : index
    %c0_12 = arith.constant 0 : index
    %6 = vector.load %arg7[%c0_11, %c0_12] : memref<1x128xf32, #tpu.memory_space<vmem>>, vector<1x128xf32>
    %c0_13 = arith.constant 0 : index
    %c0_14 = arith.constant 0 : index
    %7 = vector.load %arg8[%c0_13, %c0_14] : memref<1x128xf32, #tpu.memory_space<vmem>>, vector<1x128xf32>
    %c0_15 = arith.constant 0 : index
    %c0_16 = arith.constant 0 : index
    %8 = vector.load %arg9[%c0_15, %c0_16] : memref<1x128xf32, #tpu.memory_space<vmem>>, vector<1x128xf32>
    %9 = arith.truncf %0 : vector<16x128xf32> to vector<16x128xbf16>
    %cst = arith.constant dense<0.000000e+00> : vector<16x128xf32>
    %10 = tpu.matmul %9, %1, %cst {dimension_numbers = #tpu.dot_dimension_numbers<[1], [0], [0], [1], [0, 0, 1, 1], [], []>} : vector<16x128xbf16>, vector<128x128xbf16>, vector<16x128xf32> -> vector<16x128xf32>
    %11 = vector.broadcast %3 : vector<1x128xf32> to vector<16x128xf32>
    %12 = arith.addf %10, %11 : vector<16x128xf32>
    %cst_17 = arith.constant dense<0.000000e+00> : vector<16xf32>
    %13 = vector.multi_reduction <add>, %12, %cst_17 [1] : vector<16x128xf32> to vector<16xf32>
    %14 = vector.shape_cast %13 : vector<16xf32> to vector<16x1xf32>
    %15 = arith.mulf %12, %12 : vector<16x128xf32>
    %cst_18 = arith.constant dense<0.000000e+00> : vector<16xf32>
    %16 = vector.multi_reduction <add>, %15, %cst_18 [1] : vector<16x128xf32> to vector<16xf32>
    %17 = vector.shape_cast %16 : vector<16xf32> to vector<16x1xf32>
    %cst_19 = arith.constant 1.562500e-02 : f32
    %18 = vector.broadcast %cst_19 : f32 to vector<16x1xf32>
    %19 = arith.mulf %14, %18 : vector<16x1xf32>
    %cst_20 = arith.constant 1.562500e-02 : f32
    %20 = vector.broadcast %cst_20 : f32 to vector<16x1xf32>
    %21 = arith.mulf %17, %20 : vector<16x1xf32>
    %22 = arith.mulf %19, %19 : vector<16x1xf32>
    %23 = arith.subf %21, %22 : vector<16x1xf32>
    %cst_21 = arith.constant 0.000000e+00 : f32
    %24 = vector.broadcast %cst_21 : f32 to vector<16x1xf32>
    %25 = arith.maximumf %23, %24 : vector<16x1xf32>
    %26 = vector.broadcast %19 : vector<16x1xf32> to vector<16x128xf32>
    %27 = arith.subf %12, %26 : vector<16x128xf32>
    %cst_22 = arith.constant 9.99999974E-6 : f32
    %28 = vector.broadcast %cst_22 : f32 to vector<16x1xf32>
    %29 = arith.addf %25, %28 : vector<16x1xf32>
    %30 = math.rsqrt %29 : vector<16x1xf32>
    %31 = vector.broadcast %30 : vector<16x1xf32> to vector<16x128xf32>
    %32 = arith.mulf %27, %31 : vector<16x128xf32>
    %33 = vector.broadcast %4 : vector<1x128xf32> to vector<16x128xf32>
    %34 = arith.mulf %32, %33 : vector<16x128xf32>
    %35 = vector.broadcast %5 : vector<1x128xf32> to vector<16x128xf32>
    %36 = arith.addf %34, %35 : vector<16x128xf32>
    %cst_23 = arith.constant 5.000000e-01 : f32
    %37 = vector.broadcast %cst_23 : f32 to vector<16x128xf32>
    %38 = arith.mulf %37, %36 : vector<16x128xf32>
    %cst_24 = arith.constant 0.707106769 : f32
    %39 = vector.broadcast %cst_24 : f32 to vector<16x128xf32>
    %40 = arith.mulf %36, %39 : vector<16x128xf32>
    %41 = math.erf %40 : vector<16x128xf32>
    %cst_25 = arith.constant 1.000000e+00 : f32
    %42 = vector.broadcast %cst_25 : f32 to vector<16x128xf32>
    %43 = arith.addf %42, %41 : vector<16x128xf32>
    %44 = arith.mulf %38, %43 : vector<16x128xf32>
    %45 = arith.truncf %44 : vector<16x128xf32> to vector<16x128xbf16>
    %cst_26 = arith.constant dense<0.000000e+00> : vector<16x128xf32>
    %46 = tpu.matmul %45, %2, %cst_26 {dimension_numbers = #tpu.dot_dimension_numbers<[1], [0], [0], [1], [0, 0, 1, 1], [], []>} : vector<16x128xbf16>, vector<128x128xbf16>, vector<16x128xf32> -> vector<16x128xf32>
    %47 = vector.broadcast %6 : vector<1x128xf32> to vector<16x128xf32>
    %48 = arith.addf %46, %47 : vector<16x128xf32>
    %cst_27 = arith.constant dense<0.000000e+00> : vector<16xf32>
    %49 = vector.multi_reduction <add>, %48, %cst_27 [1] : vector<16x128xf32> to vector<16xf32>
    %50 = vector.shape_cast %49 : vector<16xf32> to vector<16x1xf32>
    %51 = arith.mulf %48, %48 : vector<16x128xf32>
    %cst_28 = arith.constant dense<0.000000e+00> : vector<16xf32>
    %52 = vector.multi_reduction <add>, %51, %cst_28 [1] : vector<16x128xf32> to vector<16xf32>
    %53 = vector.shape_cast %52 : vector<16xf32> to vector<16x1xf32>
    %cst_29 = arith.constant 3.125000e-02 : f32
    %54 = vector.broadcast %cst_29 : f32 to vector<16x1xf32>
    %55 = arith.mulf %50, %54 : vector<16x1xf32>
    %cst_30 = arith.constant 3.125000e-02 : f32
    %56 = vector.broadcast %cst_30 : f32 to vector<16x1xf32>
    %57 = arith.mulf %53, %56 : vector<16x1xf32>
    %58 = arith.mulf %55, %55 : vector<16x1xf32>
    %59 = arith.subf %57, %58 : vector<16x1xf32>
    %cst_31 = arith.constant 0.000000e+00 : f32
    %60 = vector.broadcast %cst_31 : f32 to vector<16x1xf32>
    %61 = arith.maximumf %59, %60 : vector<16x1xf32>
    %62 = vector.broadcast %55 : vector<16x1xf32> to vector<16x128xf32>
    %63 = arith.subf %48, %62 : vector<16x128xf32>
    %cst_32 = arith.constant 9.99999974E-6 : f32
    %64 = vector.broadcast %cst_32 : f32 to vector<16x1xf32>
    %65 = arith.addf %61, %64 : vector<16x1xf32>
    %66 = math.rsqrt %65 : vector<16x1xf32>
    %67 = vector.broadcast %66 : vector<16x1xf32> to vector<16x128xf32>
    %68 = arith.mulf %63, %67 : vector<16x128xf32>
    %69 = vector.broadcast %7 : vector<1x128xf32> to vector<16x128xf32>
    %70 = arith.mulf %68, %69 : vector<16x128xf32>
    %71 = vector.broadcast %8 : vector<1x128xf32> to vector<16x128xf32>
    %72 = arith.addf %70, %71 : vector<16x128xf32>
    %73 = arith.addf %0, %72 : vector<16x128xf32>
    %c0_33 = arith.constant 0 : index
    %c0_34 = arith.constant 0 : index
    %74 = vector.load %arg10[%c0_33, %c0_34] : memref<16x128xf32, #tpu.memory_space<vmem>>, vector<16x128xf32>
    tpu.vector_store %arg10[%c0_33, %c0_34], %73 {strides = array<i32>} : memref<16x128xf32, #tpu.memory_space<vmem>>, vector<16x128xf32>,
    return
  }
  func.func @transform_0(%arg0: i32) -> (i32, i32) {
    %c0_i32 = arith.constant 0 : i32
    %c0_i32_0 = arith.constant 0 : i32
    return %arg0, %c0_i32 : i32, i32
  }
  func.func @transform_1(%arg0: i32) -> (i32, i32) {
    %c0_i32 = arith.constant 0 : i32
    %c0_i32_0 = arith.constant 0 : i32
    %c0_i32_1 = arith.constant 0 : i32
    return %c0_i32, %c0_i32_0 : i32, i32
  }
  func.func @transform_2(%arg0: i32) -> (i32, i32) {
    %c0_i32 = arith.constant 0 : i32
    %c0_i32_0 = arith.constant 0 : i32
    %c0_i32_1 = arith.constant 0 : i32
    return %c0_i32, %c0_i32_0 : i32, i32
  }
  func.func @transform_3(%arg0: i32) -> (i32, i32) {
    %c0_i32 = arith.constant 0 : i32
    %c0_i32_0 = arith.constant 0 : i32
    %c0_i32_1 = arith.constant 0 : i32
    return %c0_i32, %c0_i32_0 : i32, i32
  }
  func.func @transform_4(%arg0: i32) -> (i32, i32) {
    %c0_i32 = arith.constant 0 : i32
    %c0_i32_0 = arith.constant 0 : i32
    %c0_i32_1 = arith.constant 0 : i32
    return %c0_i32, %c0_i32_0 : i32, i32
  }
  func.func @transform_5(%arg0: i32) -> (i32, i32) {
    %c0_i32 = arith.constant 0 : i32
    %c0_i32_0 = arith.constant 0 : i32
    %c0_i32_1 = arith.constant 0 : i32
    return %c0_i32, %c0_i32_0 : i32, i32
  }
  func.func @transform_6(%arg0: i32) -> (i32, i32) {
    %c0_i32 = arith.constant 0 : i32
    %c0_i32_0 = arith.constant 0 : i32
    %c0_i32_1 = arith.constant 0 : i32
    return %c0_i32, %c0_i32_0 : i32, i32
  }
  func.func @transform_7(%arg0: i32) -> (i32, i32) {
    %c0_i32 = arith.constant 0 : i32
    %c0_i32_0 = arith.constant 0 : i32
    %c0_i32_1 = arith.constant 0 : i32
    return %c0_i32, %c0_i32_0 : i32, i32
  }
  func.func @transform_8(%arg0: i32) -> (i32, i32) {
    %c0_i32 = arith.constant 0 : i32
    %c0_i32_0 = arith.constant 0 : i32
    %c0_i32_1 = arith.constant 0 : i32
    return %c0_i32, %c0_i32_0 : i32, i32
  }
  func.func @transform_9(%arg0: i32) -> (i32, i32) {
    %c0_i32 = arith.constant 0 : i32
    %c0_i32_0 = arith.constant 0 : i32
    return %arg0, %c0_i32 : i32, i32
  }
}

</mosaic_0001>

<bundles_post_ra>
// kernel: tpu_custom_call.1
= control target key start
LH: loop header
LB: loop body
LE: loop exit
PB: predicated region body
PF: predicated region fallthrough
CT: control target
= control target key end

     0   :  { %14 = vsyncpa [#allocation3], 0  ;;  %s753_s0 = inlined_call_operand.hbm [shape: f32[16,128], index: 0, kind: input, shape index: {}]   ;;  %s754_s1 = inlined_call_operand.hbm [shape: bf16[128,128], index: 1, kind: input, shape index: {}]   ;;  %s755_s2 = inlined_call_operand.vmem [shape: f32[1,128], index: 2, kind: input, shape index: {}]   ;;  %s756_s3 = inlined_call_operand.vmem [shape: f32[1,128], index: 3, kind: input, shape index: {}]   ;;  %s757_s4 = inlined_call_operand.vmem [shape: f32[1,128], index: 4, kind: input, shape index: {}]   ;;  %s758_s5 = inlined_call_operand.hbm [shape: bf16[128,128], index: 5, kind: input, shape index: {}]   ;;  %s759_s6 = inlined_call_operand.vmem [shape: f32[1,128], index: 6, kind: input, shape index: {}]   ;;  %s760_s7 = inlined_call_operand.vmem [shape: f32[1,128], index: 7, kind: input, shape index: {}]   ;;  %s761_s8 = inlined_call_operand.vmem [shape: f32[1,128], index: 8, kind: input, shape index: {}]   ;;  %s762_s9 = inlined_call_operand.hbm [shape: f32[16,128], index: 9, kind: output, shape index: {}]  }
   0x1   :  { %15 = vsyncpa [#allocation6], 0 }
   0x2   :  { %16 = vsyncpa [#allocation4], 0  ;;  %s631_s30 = smov [#allocation5]  }
   0x3   :  { %s34_s10 = sshll.u32 %s631_s30, 4  ;;  %s35_s10 = int_to_ptr.vmem [resolvable:$true] %s34_s10 }
   0x4   :  { %s553_s11 = scalar_lea.vmem %s35_s10, 1024  ;;  %p558_p1 = scmp.lt.s32.totalorder %s35_s10, %s35_s10 }
   0x5   :  { %p554_p0 = scmp.ne.s32.totalorder %s35_s10, %s553_s11  ;;  %p559_p2 = scmp.lt.s32.totalorder %s553_s11, %s553_s11 }
   0x7   :  { %p560_p3 = por %p559_p2, %p558_p1 }
   0x9   :  { %p561_p4 = pnand %p560_p3, %p554_p0 }
   0xb   :  { %564 = shalt.err (!%p561_p4)
}
   0xc   :  { %s632_s12 = smov 64   ;;  %s633_s13 = smov 4  }
   0xd   :  { %40 = dma.hbm_to_vmem [thread:$0]  %s754_s1, 1024, %s35_s10, [#allocation6], %s632_s12, %s632_s12, %s633_s13  }
   0xe   :  { %s634_s16 = smov [#allocation2]  }
   0xf   :  { %s22_s17 = sshll.u32 %s634_s16, 4  ;;  %s23_s17 = int_to_ptr.vmem [resolvable:$true] %s22_s17 }
  0x10   :  { %s573_s18 = scalar_lea.vmem %s23_s17, 256  ;;  %p578_p6 = scmp.lt.s32.totalorder %s23_s17, %s23_s17 }
  0x11   :  { %p574_p5 = scmp.ne.s32.totalorder %s23_s17, %s573_s18  ;;  %p579_p7 = scmp.lt.s32.totalorder %s573_s18, %s573_s18 }
  0x13   :  { %p580_p8 = por %p579_p7, %p578_p6 }
  0x15   :  { %p581_p9 = pnand %p580_p8, %p574_p5 }
  0x17   :  { %584 = shalt.err (!%p581_p9)
}
  0x18   :  { %s635_s19 = smov 128   ;;  %s636_s20 = smov 8  }
  0x19   :  { %28 = dma.hbm_to_vmem [thread:$0]  %s753_s0, 256, %s23_s17, [#allocation3], %s635_s19, %s635_s19, %s636_s20  }
  0x1a   :  { %s637_s1 = smov [#allocation7]  }
  0x1b   :  { %s52_s23 = sshll.u32 %s637_s1, 4  ;;  %s53_s23 = int_to_ptr.vmem [resolvable:$true] %s52_s23 }
  0x1c   :  { %s593_s24 = scalar_lea.vmem %s53_s23, 1024  ;;  %p598_p11 = scmp.lt.s32.totalorder %s53_s23, %s53_s23 }
  0x1d   :  { %p594_p10 = scmp.ne.s32.totalorder %s53_s23, %s593_s24  ;;  %p599_p12 = scmp.lt.s32.totalorder %s593_s24, %s593_s24 }
  0x1f   :  { %p600_p13 = por %p599_p12, %p598_p11 }
  0x21   :  { %p601_p0 = pnand %p600_p13, %p594_p10 }
  0x23   :  { %604 = shalt.err (!%p601_p0)
}
  0x24   :  { %58 = dma.hbm_to_vmem [thread:$0]  %s758_s5, 1024, %s53_s23, [#allocation6], %s632_s12, %s632_s12, %s633_s13  }
  0x25   :  { %625 = dma.done.wait [#allocation3], 256  }
  0x26   :  { %626 = vsyncadd [#allocation3], 4294967040 }
  0x27   :  { %627 = dma.done.wait [#allocation6], 2048  }
  0x28   :  { %628 = vsyncadd [#allocation6], 4294965248  ;;  %v638_v0 = vmov 0.0   ;;  %vm639_vm0 = vmmov 0   ;;  %v517_v1 = vld [vmem:[#allocation5 + $0x38] sm:$0xff]   ;;  %v518_v2 = vld [vmem:[#allocation5 + $0x30] sm:$0xff]  }
  0x29   :  { %467 = vmatprep.subr.bf16.mxu0 %v638_v0  ;;  %483 = vmatprep.mubr.msk.bf16.mxu0 %vm639_vm0, %v638_v0  ;;  %v519_v3 = vld [vmem:[#allocation5 + $0x28] sm:$0xff]   ;;  %v520_v4 = vld [vmem:[#allocation5 + $0x20] sm:$0xff]   ;;  %v521_v5 = vld [vmem:[#allocation5 + $0x18] sm:$0xff]   ;;  %s640_s12 = smov [#allocation8]  }
  0x2a   :  { %487 = vmatprep.subr.bf16.mxu1 %v638_v0  ;;  %503 = vmatprep.mubr.msk.bf16.mxu1 %vm639_vm0, %v638_v0  ;;  %v522_v6 = vld [vmem:[#allocation5 + $0x10] sm:$0xff]   ;;  %v523_v7 = vld [vmem:[#allocation5 + $0x8] sm:$0xff]   ;;  %v524_v8 = vld [vmem:[#allocation5] sm:$0xff]   ;;  %s414_s13 = sshll.u32 %s640_s12, 4  ;;  %s415_s13 = int_to_ptr.vmem [resolvable:$true] %s414_s13 }
  0x2b   :  { %468 = vmatpush3.bf16.msra.mxu0 %v517_v1  ;;  %v713_v9 = vld [vmem:[#allocation2] sm:$0xff]  ;;  %v715_v10 = vld [vmem:[#allocation2 + $0x8] sm:$0xff]  ;;  %v527_v23 = vld [vmem:[#allocation7 + $0x28] sm:$0xff]   ;;  %p610_p2 = scmp.lt.s32.totalorder %s415_s13, %s415_s13 }
  0x2c   :  { %469 = vmatprep.subr.bf16.mxu0 %v638_v0  ;;  %v115_v11 = vpack.c.bf16 %v715_v10, %v713_v9  ;;  %v427_v12 = vld [vmem:[%s755_s2] ss:$0 sm:$0xff]  ;;  %v525_v21 = vld [vmem:[#allocation7 + $0x38] sm:$0xff]   ;;  %v528_v24 = vld [vmem:[#allocation7 + $0x20] sm:$0xff]  }
  0x2d   :  { %488 = vmatpush3.bf16.msra.mxu1 %v525_v21  ;;  %v526_v22 = vld [vmem:[#allocation7 + $0x30] sm:$0xff]   ;;  %v529_v25 = vld [vmem:[#allocation7 + $0x18] sm:$0xff]   ;;  %v531_v27 = vld [vmem:[#allocation7 + $0x8] sm:$0xff]  }
  0x2e   :  { %489 = vmatprep.subr.bf16.mxu1 %v638_v0  ;;  %v530_v26 = vld [vmem:[#allocation7 + $0x10] sm:$0xff]   ;;  %v532_v28 = vld [vmem:[#allocation7] sm:$0xff]  }
  0x2f   :  { %470 = vmatpush3.bf16.msra.mxu0 %v518_v2  ;;  %v436_v47 = vld [vmem:[%s756_s3] ss:$0 sm:$0xff] }
  0x30   :  { %471 = vmatprep.subr.bf16.mxu0 %v638_v0  ;;  %v437_v49 = vld [vmem:[%s757_s4] ss:$0 sm:$0xff] }
  0x31   :  { %490 = vmatpush3.bf16.msra.mxu1 %v526_v22 }
  0x32   :  { %491 = vmatprep.subr.bf16.mxu1 %v638_v0 }
  0x33   :  { %472 = vmatpush3.bf16.msra.mxu0 %v519_v3 }
  0x34   :  { %473 = vmatprep.subr.bf16.mxu0 %v638_v0 }
  0x35   :  { %492 = vmatpush3.bf16.msra.mxu1 %v527_v23 }
  0x36   :  { %493 = vmatprep.subr.bf16.mxu1 %v638_v0 }
  0x37   :  { %474 = vmatpush3.bf16.msra.mxu0 %v520_v4  ;;  %v438_v4 = vld [vmem:[%s759_s6] ss:$0 sm:$0xff] }
  0x38   :  { %475 = vmatprep.subr.bf16.mxu0 %v638_v0 }
  0x39   :  { %494 = vmatpush3.bf16.msra.mxu1 %v528_v24 }
  0x3a   :  { %495 = vmatprep.subr.bf16.mxu1 %v638_v0 }
  0x3b   :  { %476 = vmatpush3.bf16.msra.mxu0 %v521_v5 }
  0x3c   :  { %477 = vmatprep.subr.bf16.mxu0 %v638_v0 }
  0x3d   :  { %496 = vmatpush3.bf16.msra.mxu1 %v529_v25 }
  0x3e   :  { %497 = vmatprep.subr.bf16.mxu1 %v638_v0 }
  0x3f   :  { %478 = vmatpush3.bf16.msra.mxu0 %v522_v6 }
  0x40   :  { %479 = vmatprep.subr.bf16.mxu0 %v638_v0 }
  0x41   :  { %498 = vmatpush3.bf16.msra.mxu1 %v530_v26 }
  0x42   :  { %499 = vmatprep.subr.bf16.mxu1 %v638_v0 }
  0x43   :  { %480 = vmatpush3.bf16.msra.mxu0 %v523_v7 }
  0x44   :  { %481 = vmatprep.subr.bf16.mxu0 %v638_v0 }
  0x45   :  { %500 = vmatpush3.bf16.msra.mxu1 %v531_v27 }
  0x46   :  { %501 = vmatprep.subr.bf16.mxu1 %v638_v0 }
  0x47   :  { %482 = vmatpush3.bf16.msra.mxu0 %v524_v8 }
  0x49   :  { %502 = vmatpush3.bf16.msra.mxu1 %v532_v28 }
  0x4a   :  { %484 = vmatmul.mubr.bf16.vlgmr.msra.gmra.mxu0 %v115_v11 }
 0x10a   :  { %v204_v13 = vpop.f32.mrf.mxu0 }
 0x10b   :  { %v205_v14 = vadd.f32 %v427_v12, %v204_v13 }
 0x10c   :  { %v485_v15 = vpop.f32.mrf.mxu0 }
 0x10d   :  { %211 = vadd.xlane.f32.xlu0 %v205_v14  ;;  %v215_v16 = vmul.f32 %v205_v14, %v205_v14 }
 0x10e   :  { %v207_v17 = vpop.f32.mrf.mxu0 }
 0x10f   :  { %v208_v18 = vadd.f32 %v427_v12, %v207_v17  ;;  %217 = vadd.xlane.f32.xlu1 %v215_v16 }
 0x110   :  { %v486_v19 = vpop.f32.mrf.mxu0 }
 0x111   :  { %213 = vadd.xlane.f32.xlu0 %v208_v18  ;;  %v216_v20 = vmul.f32 %v208_v18, %v208_v18 }
 0x113   :  { %219 = vadd.xlane.f32.xlu1 %v216_v20 }
 0x196   :  { %v212_v29 = vpop.xlane.xlu0 %211 }
 0x197   :  { %v221_v30 = vmul.f32 0.015625, %v212_v29 }
 0x198   :  { %v218_v31 = vpop.xlane.xlu1 %217 }
 0x199   :  { %v225_v32 = vmul.f32 %v221_v30, %v221_v30  ;;  %v223_v33 = vmul.f32 0.015625, %v218_v31  ;;  %v231_v45 = vsub.f32 %v205_v14, %v221_v30 }
 0x19a   :  { %v214_v34 = vpop.xlane.xlu0 %213 }
 0x19b   :  { %v227_v35 = vsub.f32 %v223_v33, %v225_v32  ;;  %v222_v36 = vmul.f32 0.015625, %v214_v34  ;;  %v447_v33 = vld [vmem:[%s760_s7] ss:$0 sm:$0xff]  ;;  %s605_s7 = scalar_lea.vmem %s415_s13, 256 }
 0x19c   :  { %v220_v37 = vpop.xlane.xlu1 %219  ;;  %p606_p1 = scmp.ne.s32.totalorder %s415_s13, %s605_s7  ;;  %p611_p3 = scmp.lt.s32.totalorder %s605_s7, %s605_s7 }
 0x19d   :  { %v229_v38 = vmax.f32 %v227_v35, 0.0  ;;  %v226_v39 = vmul.f32 %v222_v36, %v222_v36  ;;  %v224_v40 = vmul.f32 0.015625, %v220_v37  ;;  %v232_v50 = vsub.f32 %v208_v18, %v222_v36  ;;  %v448_v35 = vld [vmem:[%s761_s8] ss:$0 sm:$0xff] }
 0x19e   :  { %p612_p4 = por %p611_p3, %p610_p2 }
 0x19f   :  { %v233_v41 = vadd.f32 1e-05, %v229_v38  ;;  %v228_v42 = vsub.f32 %v224_v40, %v226_v39 }
 0x1a0   :  { %p613_p5 = pnand %p612_p4, %p606_p1 }
 0x1a1   :  { %533 = vrsqrt.f32 %v233_v41  ;;  %v230_v43 = vmax.f32 %v228_v42, 0.0 }
 0x1a3   :  { %v234_v44 = vadd.f32 1e-05, %v230_v43 }
 0x1a5   :  { %535 = vrsqrt.f32 %v234_v44 }
 0x1ae   :  { %v534_v46 = vpop.eup %533 }
 0x1af   :  { %v237_v48 = vmul.f32 %v534_v46, %v231_v45 }
 0x1b1   :  { %v245_v51 = vmul.f32 %v436_v47, %v237_v48 }
 0x1b2   :  { %v536_v52 = vpop.eup %535 }
 0x1b3   :  { %v238_v53 = vmul.f32 %v536_v52, %v232_v50  ;;  %v253_v54 = vadd.f32 %v437_v49, %v245_v51 }
 0x1b5   :  { %v246_v55 = vmul.f32 %v436_v47, %v238_v53  ;;  %v257_v56 = vmul.f32 0.70710677, %v253_v54  ;;  %v255_v62 = vmul.f32 0.5, %v253_v54 }
 0x1b7   :  { %v254_v57 = vadd.f32 %v437_v49, %v246_v55  ;;  %537 = verf.f32 %v257_v56 }
 0x1b9   :  { %v258_v58 = vmul.f32 0.70710677, %v254_v57  ;;  %v256_v63 = vmul.f32 0.5, %v254_v57 }
 0x1bb   :  { %539 = verf.f32 %v258_v58 }
 0x1c4   :  { %v538_v59 = vpop.eup %537 }
 0x1c5   :  { %v261_v60 = vadd.f32 1.0, %v538_v59 }
 0x1c7   :  { %v263_v1 = vmul.f32 %v261_v60, %v255_v62 }
 0x1c8   :  { %v540_v61 = vpop.eup %539 }
 0x1c9   :  { %v262_v0 = vadd.f32 1.0, %v540_v61 }
 0x1cb   :  { %v264_v2 = vmul.f32 %v262_v0, %v256_v63 }
 0x1cd   :  { %v265_v3 = vpack.c.bf16 %v264_v2, %v263_v1 }
 0x1cf   :  { %504 = vmatmul.mubr.bf16.vlgmr.msra.gmra.mxu1 %v265_v3 }
 0x28f   :  { %v354_v5 = vpop.f32.mrf.mxu1 }
 0x290   :  { %v355_v6 = vadd.f32 %v438_v4, %v354_v5 }
 0x291   :  { %v505_v7 = vpop.f32.mrf.mxu1 }
 0x292   :  { %361 = vadd.xlane.f32.xlu0 %v355_v6  ;;  %v365_v12 = vmul.f32 %v355_v6, %v355_v6 }
 0x293   :  { %v357_v8 = vpop.f32.mrf.mxu1 }
 0x294   :  { %v358_v11 = vadd.f32 %v438_v4, %v357_v8 }
 0x295   :  { %v506_v13 = vpop.f32.mrf.mxu1 }
 0x296   :  { %367 = vadd.xlane.f32.xlu0 %v365_v12  ;;  %363 = vadd.xlane.f32.xlu1 %v358_v11  ;;  %v366_v14 = vmul.f32 %v358_v11, %v358_v11 }
 0x29a   :  { %369 = vadd.xlane.f32.xlu1 %v366_v14 }
 0x31b   :  { %v362_v15 = vpop.xlane.xlu0 %361 }
 0x31c   :  { %v371_v16 = vmul.f32 0.03125, %v362_v15 }
 0x31e   :  { %v375_v19 = vmul.f32 %v371_v16, %v371_v16  ;;  %v381_v31 = vsub.f32 %v355_v6, %v371_v16 }
 0x31f   :  { %v368_v17 = vpop.xlane.xlu0 %367  ;;  %v364_v18 = vpop.xlane.xlu1 %363 }
 0x320   :  { %v373_v20 = vmul.f32 0.03125, %v368_v17  ;;  %v372_v21 = vmul.f32 0.03125, %v364_v18 }
 0x322   :  { %v377_v22 = vsub.f32 %v373_v20, %v375_v19  ;;  %v376_v25 = vmul.f32 %v372_v21, %v372_v21  ;;  %v382_v36 = vsub.f32 %v358_v11, %v372_v21 }
 0x323   :  { %v370_v23 = vpop.xlane.xlu1 %369 }
 0x324   :  { %v379_v24 = vmax.f32 %v377_v22, 0.0  ;;  %v374_v26 = vmul.f32 0.03125, %v370_v23 }
 0x326   :  { %v383_v27 = vadd.f32 1e-05, %v379_v24  ;;  %v378_v28 = vsub.f32 %v374_v26, %v376_v25 }
 0x328   :  { %541 = vrsqrt.f32 %v383_v27  ;;  %v380_v29 = vmax.f32 %v378_v28, 0.0 }
 0x32a   :  { %v384_v30 = vadd.f32 1e-05, %v380_v29 }
 0x32c   :  { %543 = vrsqrt.f32 %v384_v30 }
 0x335   :  { %v542_v32 = vpop.eup %541 }
 0x336   :  { %v387_v34 = vmul.f32 %v542_v32, %v381_v31 }
 0x338   :  { %v395_v37 = vmul.f32 %v447_v33, %v387_v34 }
 0x339   :  { %v544_v38 = vpop.eup %543 }
 0x33a   :  { %v388_v39 = vmul.f32 %v544_v38, %v382_v36  ;;  %v403_v40 = vadd.f32 %v448_v35, %v395_v37 }
 0x33c   :  { %v396_v41 = vmul.f32 %v447_v33, %v388_v39  ;;  %v405_v42 = vadd.f32 %v403_v40, %v713_v9 }
 0x33e   :  { %v404_v43 = vadd.f32 %v448_v35, %v396_v41  ;;  %407 = vst [vmem:[#allocation8] sm:$0xff] %v405_v42 }
 0x340   :  { %v406_v44 = vadd.f32 %v404_v43, %v715_v10 }
 0x342   :  { %408 = vst [vmem:[#allocation8 + $0x8] sm:$0xff] %v406_v44 }
 0x343   :  { %616 = shalt.err (!%p613_p5)
}
 0x344   :  { %420 = dma.vmem_to_hbm [thread:$0]  %s415_s13, 256, %s762_s9, [#allocation4], %s635_s19, %s635_s19, %s636_s20  }
 0x345   :  { %629 = dma.done.wait [#allocation4], 256  }
 0x346   :  { %630 = vsyncadd [#allocation4], 4294967040 }
 0x347   :  { %424 = vsyncpa [#allocation3], 1 }
 0x348   :  { %425 = vsyncpa [#allocation6], 1 }
 0x349   :  { %426 = vsyncpa [#allocation4], 1 }

</bundles_post_ra>
